<compile_context>
chip_gen: v5e
topology: v5e:2x2
jax: 0.10.0
libtpu: 0.0.40
codegen_flags: <defaults>
</compile_context>

<pallas_src>
import jax
import jax.numpy as jnp
from jax.experimental import pallas as pl
from jax.experimental.pallas import tpu as pltpu

TM = 256     # output-row tile (rows of A_hat / rows of the output)
TK = 256     # reduction tile  (columns of A_hat / rows of XW)
LANE = 128   # lane width — feature dims padded to a multiple of this


def _round_up(x: int, m: int) -> int:
    return ((x + m - 1) // m) * m


# ---------------------------------------------------------------------------
# Kernel 1: feature transform  XW = X @ W   (small K; computed once per layer)
# ---------------------------------------------------------------------------
def transform_kernel(x_ref, w_ref, out_ref):
    out_ref[...] = jnp.dot(
        x_ref[...], w_ref[...], preferred_element_type=jnp.float32
    ).astype(out_ref.dtype)


def transform(x, w, *, tm=TM):
    np_, fp = x.shape
    hp = w.shape[1]
    return pl.pallas_call(
        transform_kernel,
        out_shape=jax.ShapeDtypeStruct((np_, hp), jnp.bfloat16),
        grid_spec=pltpu.PrefetchScalarGridSpec(
            num_scalar_prefetch=0,
            grid=(np_ // tm,),
            in_specs=[
                pl.BlockSpec((tm, fp), lambda i: (i, 0)),
                pl.BlockSpec((fp, hp), lambda i: (0, 0)),   # weights resident
            ],
            out_specs=pl.BlockSpec((tm, hp), lambda i: (i, 0)),
        ),
        compiler_params=pltpu.CompilerParams(
            dimension_semantics=("parallel",),
            vmem_limit_bytes=32 * 1024 * 1024,
        ),
        cost_estimate=pl.CostEstimate(
            flops=2 * np_ * fp * hp,
            transcendentals=0,
            bytes_accessed=4 * np_ * fp + 4 * fp * hp + 2 * np_ * hp,
        ),
    )(x, w)


# ---------------------------------------------------------------------------
# Kernel 2: propagation  out = relu(A_hat @ XW + b)
#   grid = (row tiles, reduction tiles); f32 accumulator; bias+ReLU at finalize
# ---------------------------------------------------------------------------
def propagate_kernel(a_ref, xw_ref, b_ref, out_ref, acc_ref):
    k = pl.program_id(1)

    @pl.when(k == 0)
    def _():
        acc_ref[...] = jnp.zeros_like(acc_ref)

    acc_ref[...] += jnp.dot(
        a_ref[...], xw_ref[...], preferred_element_type=jnp.float32
    )

    @pl.when(k == pl.num_programs(1) - 1)
    def _():
        out_ref[...] = jnp.maximum(acc_ref[...] + b_ref[...], 0.0).astype(out_ref.dtype)


def propagate_relu(a_hat, xw, bias, *, tm=TM, tk=TK):
    np_ = a_hat.shape[0]
    hp = xw.shape[1]
    return pl.pallas_call(
        propagate_kernel,
        out_shape=jax.ShapeDtypeStruct((np_, hp), jnp.float32),
        grid_spec=pltpu.PrefetchScalarGridSpec(
            num_scalar_prefetch=0,
            grid=(np_ // tm, np_ // tk),
            in_specs=[
                pl.BlockSpec((tm, tk), lambda i, k: (i, k)),   # A_hat row/col tile
                pl.BlockSpec((tk, hp), lambda i, k: (k, 0)),   # XW reduction slab
                pl.BlockSpec((1, hp), lambda i, k: (0, 0)),    # bias, resident
            ],
            out_specs=pl.BlockSpec((tm, hp), lambda i, k: (i, 0)),
            scratch_shapes=[pltpu.VMEM((tm, hp), jnp.float32)],
        ),
        compiler_params=pltpu.CompilerParams(
            dimension_semantics=("parallel", "arbitrary"),
            vmem_limit_bytes=32 * 1024 * 1024,
        ),
        cost_estimate=pl.CostEstimate(
            flops=2 * np_ * np_ * hp,
            transcendentals=0,
            bytes_accessed=2 * np_ * np_ + 2 * np_ * hp + 4 * hp + 4 * np_ * hp,
        ),
    )(a_hat, xw, bias)


# ---------------------------------------------------------------------------
# Plain-JAX glue: GCN-normalized dense adjacency (matches PyG GCNConv norm)
# ---------------------------------------------------------------------------
def normalized_adjacency(edge_index: jnp.ndarray, num_nodes: int) -> jnp.ndarray:
    src, dst = edge_index[0], edge_index[1]
    a = jnp.zeros((num_nodes, num_nodes), jnp.float32)
    a = a.at[dst, src].set(1.0)                                    # message j -> i
    a = jnp.maximum(a, jnp.eye(num_nodes, dtype=jnp.float32))      # add remaining self-loops (weight 1)
    deg = jnp.sum(a, axis=1)
    d_inv_sqrt = jnp.where(deg > 0, jax.lax.rsqrt(deg), 0.0)
    return a * d_inv_sqrt[:, None] * d_inv_sqrt[None, :]


def encoder_forward(x, edge_index, params, *, tm=TM, tk=TK):
    n, f = x.shape
    h = params["w1"].shape[1]

    pad = max(tm, tk)
    np_ = max(_round_up(n, pad), pad)
    fp = _round_up(f, LANE)
    hp = _round_up(h, LANE)

    # Zero-pad everything to lane/tile-aligned shapes (padding never leaks into
    # the valid rows/cols because padded A columns and W rows are zero).
    a_hat = normalized_adjacency(edge_index, n)
    a_p = jnp.zeros((np_, np_), jnp.float32).at[:n, :n].set(a_hat).astype(jnp.bfloat16)
    x_p = jnp.zeros((np_, fp), jnp.float32).at[:n, :f].set(x.astype(jnp.float32))
    w1 = jnp.zeros((fp, hp), jnp.float32).at[:f, :h].set(params["w1"])
    w2 = jnp.zeros((hp, hp), jnp.float32).at[:h, :h].set(params["w2"])
    b1 = jnp.zeros((1, hp), jnp.float32).at[0, :h].set(params["b1"])
    b2 = jnp.zeros((1, hp), jnp.float32).at[0, :h].set(params["b2"])

    # Layer 1: relu(A_hat @ (X @ W1) + b1)
    xw1 = transform(x_p, w1, tm=tm)
    h1 = propagate_relu(a_p, xw1, b1, tm=tm, tk=tk)

    # F.dropout(x, p, training=self.training): eval mode -> identity.
    # TODO(synk): training-mode dropout would use pltpu.prng_seed/prng_random_bits.

    # Layer 2: relu(A_hat @ (H1 @ W2) + b2)
    xw2 = transform(h1, w2, tm=tm)
    h2 = propagate_relu(a_p, xw2, b2, tm=tm, tk=tk)

    return h2[:n, :h]


def init_params(key, nfeat, nhid):
    """Glorot-uniform weights + zero bias (GCNConv defaults)."""
    k1, k2 = jax.random.split(key)

    def glorot(k, fan_in, fan_out):
        limit = jnp.sqrt(6.0 / (fan_in + fan_out))
        return jax.random.uniform(k, (fan_in, fan_out), jnp.float32, -limit, limit)

    return {
        "w1": glorot(k1, nfeat, nhid),
        "b1": jnp.zeros((nhid,), jnp.float32),
        "w2": glorot(k2, nhid, nhid),
        "b2": jnp.zeros((nhid,), jnp.float32),
    }


if __name__ == "__main__":
    key = jax.random.PRNGKey(0)
    N, NFEAT, NHID, E = 16, 32, 32, 40

    kx, ke, kp = jax.random.split(key, 3)
    x = jax.random.normal(kx, (N, NFEAT), jnp.float32)
    edge_index = jax.random.randint(ke, (2, E), 0, N, jnp.int32)
    params = init_params(kp, NFEAT, NHID)

    out = encoder_forward(x, edge_index, params)
    jax.block_until_ready(out)

    assert out.shape == (N, NHID)
    assert bool(jnp.all(out >= 0.0))  # ReLU output
    print("KERNEL_OK")
</pallas_src>

<mosaic_0001>
module attributes {stable_mosaic.version = 11 : i64} {
  func.func @transform_kernel(%arg0: i32, %arg1: memref<256x128xf32, #tpu.memory_space<vmem>>, %arg2: memref<128x128xf32, #tpu.memory_space<vmem>>, %arg3: memref<256x128xbf16, #tpu.memory_space<vmem>>) attributes {dimension_semantics = [#tpu.dimension_semantics<parallel>], iteration_bounds = array<i64: 1>, scalar_prefetch = 0 : i64, scratch_operands = 0 : i64, tpu.core_type = #tpu.core_type<tc>, window_params = [{transform_indices = @transform_0, window_bounds = array<i64: 256, 128>}, {pipeline_mode = #tpu.pipeline_mode<synchronous>, transform_indices = @transform_1, window_bounds = array<i64: 128, 128>}, {transform_indices = @transform_2, window_bounds = array<i64: 256, 128>}]} {
    %c0 = arith.constant 0 : index
    %c0_0 = arith.constant 0 : index
    %0 = vector.load %arg1[%c0, %c0_0] : memref<256x128xf32, #tpu.memory_space<vmem>>, vector<256x128xf32>
    %c0_1 = arith.constant 0 : index
    %c0_2 = arith.constant 0 : index
    %1 = vector.load %arg2[%c0_1, %c0_2] : memref<128x128xf32, #tpu.memory_space<vmem>>, vector<128x128xf32>
    %cst = arith.constant dense<0.000000e+00> : vector<256x128xf32>
    %2 = tpu.matmul %0, %1, %cst {dimension_numbers = #tpu.dot_dimension_numbers<[1], [0], [0], [1], [0, 0, 1, 1], [], []>} : vector<256x128xf32>, vector<128x128xf32>, vector<256x128xf32> -> vector<256x128xf32>
    %3 = arith.truncf %2 : vector<256x128xf32> to vector<256x128xbf16>
    %c0_3 = arith.constant 0 : index
    %c0_4 = arith.constant 0 : index
    %4 = vector.load %arg3[%c0_3, %c0_4] : memref<256x128xbf16, #tpu.memory_space<vmem>>, vector<256x128xbf16>
    tpu.vector_store %arg3[%c0_3, %c0_4], %3 {strides = array<i32>} : memref<256x128xbf16, #tpu.memory_space<vmem>>, vector<256x128xbf16>,
    return
  }
  func.func @transform_0(%arg0: i32) -> (i32, i32) {
    %c0_i32 = arith.constant 0 : i32
    %c0_i32_0 = arith.constant 0 : i32
    return %arg0, %c0_i32 : i32, i32
  }
  func.func @transform_1(%arg0: i32) -> (i32, i32) {
    %c0_i32 = arith.constant 0 : i32
    %c0_i32_0 = arith.constant 0 : i32
    %c0_i32_1 = arith.constant 0 : i32
    return %c0_i32, %c0_i32_0 : i32, i32
  }
  func.func @transform_2(%arg0: i32) -> (i32, i32) {
    %c0_i32 = arith.constant 0 : i32
    %c0_i32_0 = arith.constant 0 : i32
    return %arg0, %c0_i32 : i32, i32
  }
}

</mosaic_0001>

<bundles_post_ra>
// kernel: tpu_custom_call.1
= control target key start
LH: loop header
LB: loop body
LE: loop exit
PB: predicated region body
PF: predicated region fallthrough
CT: control target
= control target key end

     0   :  { %7 = vsyncpa [#allocation3], 0  ;;  %s548_s0 = inlined_call_operand.hbm [shape: f32[256,128], index: 0, kind: input, shape index: {}]   ;;  %s549_s1 = inlined_call_operand.hbm [shape: f32[128,128], index: 1, kind: input, shape index: {}]   ;;  %s550_s2 = inlined_call_operand.hbm [shape: bf16[256,128], index: 2, kind: output, shape index: {}]  }
   0x1   :  { %8 = vsyncpa [#allocation6], 0 }
   0x2   :  { %9 = vsyncpa [#allocation4], 0  ;;  %s14_s11 = sshll.u32 %s548_s0, 4  ;;  %s517_s12 = smov [#allocation2]   ;;  %s15_s11 = int_to_ptr.hbm [resolvable:$true] %s14_s11 }
   0x3   :  { %s16_s13 = sshll.u32 %s517_s12, 4  ;;  %s27_s16 = sshll.u32 %s549_s1, 4  ;;  %s17_s13 = int_to_ptr.vmem [resolvable:$true] %s16_s13  ;;  %s28_s16 = int_to_ptr.hbm [resolvable:$true] %s27_s16 }
   0x4   :  { %s518_s17 = smov 128   ;;  %s519_s18 = smov 8  }
   0x5   :  { %22 = dma.hbm_to_vmem [thread:$0]  %s15_s11, 4096, %s17_s13, [#allocation3], %s518_s17, %s518_s17, %s519_s18  }
   0x6   :  { %s520_s19 = smov [#allocation5]  }
   0x7   :  { %s29_s20 = sshll.u32 %s520_s19, 4  ;;  %s30_s20 = int_to_ptr.vmem [resolvable:$true] %s29_s20 }
   0x8   :  { %35 = dma.hbm_to_vmem [thread:$0]  %s28_s16, 2048, %s30_s20, [#allocation6], %s518_s17, %s518_s17, %s519_s18  }
   0x9   :  { %511 = dma.done.wait [#allocation3], 4096  }
   0xa   :  { %512 = vsyncadd [#allocation3], 4294963200 }
   0xb   :  { %513 = dma.done.wait [#allocation6], 2048  }
   0xc   :  { %514 = vsyncadd [#allocation6], 4294965248  ;;  %v91_v0 = vld [vmem:[#allocation5 + $0x78] sm:$0xff]  ;;  %v90_v1 = vld [vmem:[#allocation5 + $0x70] sm:$0xff]  ;;  %s521_s0 = smov [#allocation7]   ;;  %s275_s23 = sshll.u32 %s550_s2, 4  ;;  %s276_s23 = int_to_ptr.hbm [resolvable:$true] %s275_s23 }
   0xd   :  { %92 = vmatpush.msra.mxu0 %v91_v0  ;;  %384 = vmatpush.msra.mxu1 %v91_v0  ;;  %v89_v2 = vld [vmem:[#allocation5 + $0x68] sm:$0xff]  ;;  %v88_v3 = vld [vmem:[#allocation5 + $0x60] sm:$0xff]  ;;  %v87_v4 = vld [vmem:[#allocation5 + $0x58] sm:$0xff]  ;;  %s273_s1 = sshll.u32 %s521_s0, 4  ;;  %s522_s24 = smov 64   ;;  %s274_s1 = int_to_ptr.vmem [resolvable:$true] %s273_s1 }
   0xe   :  { %385 = vmatpush.msra.mxu2 %v91_v0  ;;  %386 = vmatpush.msra.mxu3 %v91_v0  ;;  %v86_v5 = vld [vmem:[#allocation5 + $0x50] sm:$0xff]  ;;  %v85_v6 = vld [vmem:[#allocation5 + $0x48] sm:$0xff]  ;;  %v84_v7 = vld [vmem:[#allocation5 + $0x40] sm:$0xff]  ;;  %s523_s25 = smov 4  }
   0xf   :  { %93 = vmatpush.msra.mxu0 %v90_v1  ;;  %387 = vmatpush.msra.mxu1 %v90_v1  ;;  %v83_v8 = vld [vmem:[#allocation5 + $0x38] sm:$0xff]  ;;  %v82_v9 = vld [vmem:[#allocation5 + $0x30] sm:$0xff]  ;;  %v81_v10 = vld [vmem:[#allocation5 + $0x28] sm:$0xff] }
  0x10   :  { %388 = vmatpush.msra.mxu2 %v90_v1  ;;  %389 = vmatpush.msra.mxu3 %v90_v1  ;;  %v80_v11 = vld [vmem:[#allocation5 + $0x20] sm:$0xff]  ;;  %v79_v12 = vld [vmem:[#allocation5 + $0x18] sm:$0xff]  ;;  %v78_v13 = vld [vmem:[#allocation5 + $0x10] sm:$0xff] }
  0x11   :  { %94 = vmatpush.msra.mxu0 %v89_v2  ;;  %390 = vmatpush.msra.mxu1 %v89_v2  ;;  %v77_v14 = vld [vmem:[#allocation5 + $0x8] sm:$0xff]  ;;  %v76_v15 = vld [vmem:[#allocation5] sm:$0xff]  ;;  %v46_v24 = vld [vmem:[#allocation2 + $0x10] sm:$0xff] }
  0x12   :  { %391 = vmatpush.msra.mxu2 %v89_v2  ;;  %392 = vmatpush.msra.mxu3 %v89_v2  ;;  %v44_v16 = vld [vmem:[#allocation2] sm:$0xff]  ;;  %v45_v20 = vld [vmem:[#allocation2 + $0x8] sm:$0xff]  ;;  %v54_v25 = vld [vmem:[#allocation2 + $0x50] sm:$0xff] }
  0x13   :  { %95 = vmatpush.msra.mxu0 %v88_v3  ;;  %393 = vmatpush.msra.mxu1 %v88_v3  ;;  %v52_v17 = vld [vmem:[#allocation2 + $0x40] sm:$0xff]  ;;  %v53_v21 = vld [vmem:[#allocation2 + $0x48] sm:$0xff]  ;;  %v62_v26 = vld [vmem:[#allocation2 + $0x90] sm:$0xff] }
  0x14   :  { %394 = vmatpush.msra.mxu2 %v88_v3  ;;  %395 = vmatpush.msra.mxu3 %v88_v3  ;;  %v60_v18 = vld [vmem:[#allocation2 + $0x80] sm:$0xff]  ;;  %v61_v22 = vld [vmem:[#allocation2 + $0x88] sm:$0xff]  ;;  %v70_v27 = vld [vmem:[#allocation2 + $0xd0] sm:$0xff] }
  0x15   :  { %96 = vmatpush.msra.mxu0 %v87_v4  ;;  %396 = vmatpush.msra.mxu1 %v87_v4  ;;  %v68_v19 = vld [vmem:[#allocation2 + $0xc0] sm:$0xff]  ;;  %v69_v23 = vld [vmem:[#allocation2 + $0xc8] sm:$0xff]  ;;  %v47_v28 = vld [vmem:[#allocation2 + $0x18] sm:$0xff] }
  0x16   :  { %397 = vmatpush.msra.mxu2 %v87_v4  ;;  %398 = vmatpush.msra.mxu3 %v87_v4  ;;  %v55_v29 = vld [vmem:[#allocation2 + $0x58] sm:$0xff]  ;;  %v48_v32 = vld [vmem:[#allocation2 + $0x20] sm:$0xff]  ;;  %v49_v36 = vld [vmem:[#allocation2 + $0x28] sm:$0xff] }
  0x17   :  { %97 = vmatpush.msra.mxu0 %v86_v5  ;;  %399 = vmatpush.msra.mxu1 %v86_v5  ;;  %v63_v30 = vld [vmem:[#allocation2 + $0x98] sm:$0xff]  ;;  %v56_v33 = vld [vmem:[#allocation2 + $0x60] sm:$0xff]  ;;  %v57_v37 = vld [vmem:[#allocation2 + $0x68] sm:$0xff] }
  0x18   :  { %400 = vmatpush.msra.mxu2 %v86_v5  ;;  %401 = vmatpush.msra.mxu3 %v86_v5  ;;  %v71_v31 = vld [vmem:[#allocation2 + $0xd8] sm:$0xff]  ;;  %v64_v34 = vld [vmem:[#allocation2 + $0xa0] sm:$0xff]  ;;  %v65_v38 = vld [vmem:[#allocation2 + $0xa8] sm:$0xff] }
  0x19   :  { %98 = vmatpush.msra.mxu0 %v85_v6  ;;  %402 = vmatpush.msra.mxu1 %v85_v6  ;;  %v72_v35 = vld [vmem:[#allocation2 + $0xe0] sm:$0xff]  ;;  %v73_v39 = vld [vmem:[#allocation2 + $0xe8] sm:$0xff]  ;;  %v50_v40 = vld [vmem:[#allocation2 + $0x30] sm:$0xff] }
  0x1a   :  { %403 = vmatpush.msra.mxu2 %v85_v6  ;;  %404 = vmatpush.msra.mxu3 %v85_v6  ;;  %v58_v41 = vld [vmem:[#allocation2 + $0x70] sm:$0xff]  ;;  %v51_v44 = vld [vmem:[#allocation2 + $0x38] sm:$0xff] }
  0x1b   :  { %99 = vmatpush.msra.mxu0 %v84_v7  ;;  %405 = vmatpush.msra.mxu1 %v84_v7  ;;  %v66_v42 = vld [vmem:[#allocation2 + $0xb0] sm:$0xff]  ;;  %v59_v45 = vld [vmem:[#allocation2 + $0x78] sm:$0xff] }
  0x1c   :  { %406 = vmatpush.msra.mxu2 %v84_v7  ;;  %407 = vmatpush.msra.mxu3 %v84_v7  ;;  %v74_v43 = vld [vmem:[#allocation2 + $0xf0] sm:$0xff]  ;;  %v67_v46 = vld [vmem:[#allocation2 + $0xb8] sm:$0xff] }
  0x1d   :  { %100 = vmatpush.msra.mxu0 %v83_v8  ;;  %408 = vmatpush.msra.mxu1 %v83_v8  ;;  %v75_v47 = vld [vmem:[#allocation2 + $0xf8] sm:$0xff] }
  0x1e   :  { %409 = vmatpush.msra.mxu2 %v83_v8  ;;  %410 = vmatpush.msra.mxu3 %v83_v8 }
  0x1f   :  { %101 = vmatpush.msra.mxu0 %v82_v9  ;;  %411 = vmatpush.msra.mxu1 %v82_v9 }
  0x20   :  { %412 = vmatpush.msra.mxu2 %v82_v9  ;;  %413 = vmatpush.msra.mxu3 %v82_v9 }
  0x21   :  { %102 = vmatpush.msra.mxu0 %v81_v10  ;;  %414 = vmatpush.msra.mxu1 %v81_v10 }
  0x22   :  { %415 = vmatpush.msra.mxu2 %v81_v10  ;;  %416 = vmatpush.msra.mxu3 %v81_v10 }
  0x23   :  { %103 = vmatpush.msra.mxu0 %v80_v11  ;;  %417 = vmatpush.msra.mxu1 %v80_v11 }
  0x24   :  { %418 = vmatpush.msra.mxu2 %v80_v11  ;;  %419 = vmatpush.msra.mxu3 %v80_v11 }
  0x25   :  { %104 = vmatpush.msra.mxu0 %v79_v12  ;;  %420 = vmatpush.msra.mxu1 %v79_v12 }
  0x26   :  { %421 = vmatpush.msra.mxu2 %v79_v12  ;;  %422 = vmatpush.msra.mxu3 %v79_v12 }
  0x27   :  { %105 = vmatpush.msra.mxu0 %v78_v13  ;;  %423 = vmatpush.msra.mxu1 %v78_v13 }
  0x28   :  { %424 = vmatpush.msra.mxu2 %v78_v13  ;;  %425 = vmatpush.msra.mxu3 %v78_v13 }
  0x29   :  { %106 = vmatpush.msra.mxu0 %v77_v14  ;;  %426 = vmatpush.msra.mxu1 %v77_v14 }
  0x2a   :  { %427 = vmatpush.msra.mxu2 %v77_v14  ;;  %428 = vmatpush.msra.mxu3 %v77_v14 }
  0x2b   :  { %107 = vmatpush.msra.mxu0 %v76_v15  ;;  %429 = vmatpush.msra.mxu1 %v76_v15 }
  0x2c   :  { %430 = vmatpush.msra.mxu2 %v76_v15  ;;  %431 = vmatpush.msra.mxu3 %v76_v15 }
  0x2d   :  { %108 = vmatmul.f32.vlgmr.msra.gmra.mxu0 %v44_v16  ;;  %132 = vmatmul.f32.vlgmr.msra.gmra.mxu1 %v52_v17 }
  0x2e   :  { %156 = vmatmul.f32.vlgmr.msra.gmra.mxu2 %v60_v18  ;;  %180 = vmatmul.f32.vlgmr.msra.gmra.mxu3 %v68_v19 }
  0x35   :  { %111 = vmatmul.f32.gmra.mxu0 %v45_v20  ;;  %135 = vmatmul.f32.gmra.mxu1 %v53_v21 }
  0x36   :  { %159 = vmatmul.f32.gmra.mxu2 %v61_v22  ;;  %183 = vmatmul.f32.gmra.mxu3 %v69_v23 }
  0x3d   :  { %114 = vmatmul.f32.gmra.mxu0 %v46_v24  ;;  %138 = vmatmul.f32.gmra.mxu1 %v54_v25 }
  0x3e   :  { %162 = vmatmul.f32.gmra.mxu2 %v62_v26  ;;  %186 = vmatmul.f32.gmra.mxu3 %v70_v27 }
  0x45   :  { %117 = vmatmul.f32.gmra.mxu0 %v47_v28  ;;  %141 = vmatmul.f32.gmra.mxu1 %v55_v29 }
  0x46   :  { %165 = vmatmul.f32.gmra.mxu2 %v63_v30  ;;  %189 = vmatmul.f32.gmra.mxu3 %v71_v31 }
  0x4d   :  { %120 = vmatmul.f32.gmra.mxu0 %v48_v32  ;;  %144 = vmatmul.f32.gmra.mxu1 %v56_v33 }
  0x4e   :  { %168 = vmatmul.f32.gmra.mxu2 %v64_v34  ;;  %192 = vmatmul.f32.gmra.mxu3 %v72_v35 }
  0x55   :  { %123 = vmatmul.f32.gmra.mxu0 %v49_v36  ;;  %147 = vmatmul.f32.gmra.mxu1 %v57_v37 }
  0x56   :  { %171 = vmatmul.f32.gmra.mxu2 %v65_v38  ;;  %195 = vmatmul.f32.gmra.mxu3 %v73_v39 }
  0x5d   :  { %126 = vmatmul.f32.gmra.mxu0 %v50_v40  ;;  %150 = vmatmul.f32.gmra.mxu1 %v58_v41 }
  0x5e   :  { %174 = vmatmul.f32.gmra.mxu2 %v66_v42  ;;  %198 = vmatmul.f32.gmra.mxu3 %v74_v43 }
  0x65   :  { %129 = vmatmul.f32.gmra.mxu0 %v51_v44  ;;  %153 = vmatmul.f32.gmra.mxu1 %v59_v45 }
  0x66   :  { %177 = vmatmul.f32.gmra.mxu2 %v67_v46  ;;  %201 = vmatmul.f32.gmra.mxu3 %v75_v47 }
  0xaa   :  { %v109_v48 = vpop.f32.mrf.mxu0  ;;  %v133_v49 = vpop.f32.mrf.mxu1 }
  0xb1   :  { %v157_v50 = vpop.f32.mrf.mxu2  ;;  %v181_v51 = vpop.f32.mrf.mxu3 }
  0xb2   :  { %v112_v52 = vpop.f32.mrf.mxu0  ;;  %v136_v53 = vpop.f32.mrf.mxu1 }
  0xb3   :  { %v292_v54 = vpack.c.bf16 %v112_v52, %v109_v48  ;;  %v312_v55 = vpack.c.bf16 %v136_v53, %v133_v49 }
  0xb5   :  { %293 = vst [vmem:[#allocation7] sm:$0xff] %v292_v54  }
  0xb6   :  { %372 = vst [vmem:[#allocation7 + $0x20] sm:$0xff] %v312_v55  }
  0xb9   :  { %v160_v56 = vpop.f32.mrf.mxu2  ;;  %v184_v57 = vpop.f32.mrf.mxu3 }
  0xba   :  { %v332_v58 = vpack.c.bf16 %v160_v56, %v157_v50  ;;  %v352_v59 = vpack.c.bf16 %v184_v57, %v181_v51  ;;  %v115_v60 = vpop.f32.mrf.mxu0  ;;  %v139_v61 = vpop.f32.mrf.mxu1 }
  0xbc   :  { %376 = vst [vmem:[#allocation7 + $0x40] sm:$0xff] %v332_v58  }
  0xbd   :  { %380 = vst [vmem:[#allocation7 + $0x60] sm:$0xff] %v352_v59  }
  0xc1   :  { %v163_v62 = vpop.f32.mrf.mxu2  ;;  %v187_v63 = vpop.f32.mrf.mxu3 }
  0xc2   :  { %v118_v0 = vpop.f32.mrf.mxu0  ;;  %v142_v1 = vpop.f32.mrf.mxu1 }
  0xc3   :  { %v297_v2 = vpack.c.bf16 %v118_v0, %v115_v60  ;;  %v317_v3 = vpack.c.bf16 %v142_v1, %v139_v61 }
  0xc5   :  { %369 = vst [vmem:[#allocation7 + $0x8] sm:$0xff] %v297_v2  }
  0xc6   :  { %373 = vst [vmem:[#allocation7 + $0x28] sm:$0xff] %v317_v3  }
  0xc9   :  { %v166_v4 = vpop.f32.mrf.mxu2  ;;  %v190_v5 = vpop.f32.mrf.mxu3 }
  0xca   :  { %v337_v6 = vpack.c.bf16 %v166_v4, %v163_v62  ;;  %v357_v7 = vpack.c.bf16 %v190_v5, %v187_v63  ;;  %v121_v8 = vpop.f32.mrf.mxu0  ;;  %v145_v9 = vpop.f32.mrf.mxu1 }
  0xcc   :  { %377 = vst [vmem:[#allocation7 + $0x48] sm:$0xff] %v337_v6  }
  0xcd   :  { %381 = vst [vmem:[#allocation7 + $0x68] sm:$0xff] %v357_v7  }
  0xd1   :  { %v169_v10 = vpop.f32.mrf.mxu2  ;;  %v193_v11 = vpop.f32.mrf.mxu3 }
  0xd2   :  { %v124_v12 = vpop.f32.mrf.mxu0  ;;  %v148_v13 = vpop.f32.mrf.mxu1 }
  0xd3   :  { %v302_v14 = vpack.c.bf16 %v124_v12, %v121_v8  ;;  %v322_v15 = vpack.c.bf16 %v148_v13, %v145_v9 }
  0xd5   :  { %370 = vst [vmem:[#allocation7 + $0x10] sm:$0xff] %v302_v14  }
  0xd6   :  { %374 = vst [vmem:[#allocation7 + $0x30] sm:$0xff] %v322_v15  }
  0xd9   :  { %v172_v16 = vpop.f32.mrf.mxu2  ;;  %v196_v17 = vpop.f32.mrf.mxu3 }
  0xda   :  { %v342_v18 = vpack.c.bf16 %v172_v16, %v169_v10  ;;  %v362_v19 = vpack.c.bf16 %v196_v17, %v193_v11  ;;  %v127_v20 = vpop.f32.mrf.mxu0  ;;  %v151_v21 = vpop.f32.mrf.mxu1 }
  0xdc   :  { %378 = vst [vmem:[#allocation7 + $0x50] sm:$0xff] %v342_v18  }
  0xdd   :  { %382 = vst [vmem:[#allocation7 + $0x70] sm:$0xff] %v362_v19  }
  0xe1   :  { %v175_v22 = vpop.f32.mrf.mxu2  ;;  %v199_v23 = vpop.f32.mrf.mxu3 }
  0xe2   :  { %v130_v24 = vpop.f32.mrf.mxu0  ;;  %v154_v25 = vpop.f32.mrf.mxu1 }
  0xe3   :  { %v307_v26 = vpack.c.bf16 %v130_v24, %v127_v20  ;;  %v327_v27 = vpack.c.bf16 %v154_v25, %v151_v21 }
  0xe5   :  { %371 = vst [vmem:[#allocation7 + $0x18] sm:$0xff] %v307_v26  }
  0xe6   :  { %375 = vst [vmem:[#allocation7 + $0x38] sm:$0xff] %v327_v27  }
  0xe9   :  { %v178_v28 = vpop.f32.mrf.mxu2  ;;  %v202_v29 = vpop.f32.mrf.mxu3 }
  0xea   :  { %v347_v30 = vpack.c.bf16 %v178_v28, %v175_v22  ;;  %v367_v31 = vpack.c.bf16 %v202_v29, %v199_v23 }
  0xec   :  { %379 = vst [vmem:[#allocation7 + $0x58] sm:$0xff] %v347_v30  }
  0xed   :  { %383 = vst [vmem:[#allocation7 + $0x78] sm:$0xff] %v367_v31  }
  0xee   :  { %281 = dma.vmem_to_hbm [thread:$0]  %s274_s1, 2048, %s276_s23, [#allocation4], %s522_s24, %s522_s24, %s523_s25  }
  0xef   :  { %515 = dma.done.wait [#allocation4], 2048  }
  0xf0   :  { %516 = vsyncadd [#allocation4], 4294965248 }
  0xf1   :  { %286 = vsyncpa [#allocation3], 1 }
  0xf2   :  { %287 = vsyncpa [#allocation6], 1 }
  0xf3   :  { %288 = vsyncpa [#allocation4], 1 }

</bundles_post_ra>
